<compile_context>
chip_gen: v7x
topology: tpu7x:2x2x1
jax: 0.10.0
libtpu: 0.0.40
codegen_flags: <defaults>
</compile_context>

<pallas_src>
import math

import jax
import jax.numpy as jnp
from jax.experimental import pallas as pl
from jax.experimental.pallas import tpu as pltpu

_SHIFT = math.log(2.0)
_SOFTPLUS_THRESHOLD = 20.0  # matches torch.nn.functional.softplus default
_LANES = 128
_SUBLANES = 8


def _shifted_softplus_kernel(x_ref, o_ref):
    x = x_ref[...]
    # PyTorch softplus upcasts 16-bit floats to f32 internally; do the same so
    # bf16/f16 outputs match torch beyond a bf16 ULP. For f32 inputs the cast
    # is a no-op.
    xf = x.astype(jnp.float32)
    # softplus (beta=1, threshold=20): linear for x > threshold, else
    # log1p(exp(x)). The where() discards the inf produced by exp() for very
    # large (or garbage out-of-bounds) x, so there is no NaN on the kept lanes.
    sp = jnp.where(xf > _SOFTPLUS_THRESHOLD, xf, jnp.log1p(jnp.exp(xf)))
    o_ref[...] = (sp - _SHIFT).astype(o_ref.dtype)


def _round_up(a: int, b: int) -> int:
    return ((a + b - 1) // b) * b


def _default_tile_bytes() -> int:
    """Pick a tile byte budget by TPU generation (safe fallback: 4 MiB)."""
    try:
        kind = jax.devices()[0].device_kind.lower()
    except Exception:  # no devices / non-TPU backend
        return 4 * 1024 * 1024
    if "v6" in kind:
        return 8 * 1024 * 1024   # 128 MiB VMEM; amortize 0.35us step @ ~1.4 TB/s
    if "v5" in kind:
        return 2 * 1024 * 1024   # ~820 GB/s HBM; per-step overhead already <10%
    return 4 * 1024 * 1024       # v7x (64 MiB VMEM, 3.2 TB/s) and unknown chips


def shifted_softplus(x: jax.Array, *, tile_bytes: int | None = None) -> jax.Array:
    """Apply ShiftedSoftplus (softplus(x) - log 2) elementwise to any array."""
    orig_shape = x.shape
    orig_dtype = x.dtype
    n = x.size
    if n == 0:
        return x

    itemsize = jnp.dtype(orig_dtype).itemsize
    if tile_bytes is None:
        tile_bytes = _default_tile_bytes()

    # dtype-aware sublane multiple: f32 -> 8 rows/vreg, bf16 -> 16, int8/fp8 -> 32.
    sub = max(_SUBLANES, (_SUBLANES * 4) // itemsize)

    # Only pad when the element count isn't a multiple of 128 lanes (rare, and
    # then only by <128 elements). For 128-multiple sizes this path is a pure
    # free reshape - no extra HBM passes.
    n_pad128 = _round_up(n, _LANES)
    flat = jnp.ravel(x)
    padded = n_pad128 != n
    if padded:
        flat = jnp.pad(flat, (0, n_pad128 - n))
    rows = n_pad128 // _LANES
    x2d = flat.reshape(rows, _LANES)

    # Rows per tile from the byte budget: tile_bytes ~= tr * 128 * dtype_size.
    tr = max(sub, (tile_bytes // (_LANES * itemsize)) // sub * sub)
    # Never allocate a block larger than the (sublane-rounded) data.
    tr = min(tr, _round_up(rows, sub))
    # Megacore balance (v7x, 2 TCs): if the data spans multiple tiles, keep at
    # least 4 grid steps so dimension_semantics=("parallel",) shards evenly.
    if rows > tr:
        tr = min(tr, max(sub, _round_up(pl.cdiv(rows, 4), sub)))

    # Final block may be partial: OOB input loads are garbage (discarded by the
    # elementwise math + masked store); OOB output stores are dropped.
    grid_steps = pl.cdiv(rows, tr)

    # Double-buffered in + out tiles plus headroom, clamped to stay safe on
    # every generation (v7x physical VMEM is 64 MiB per TC).
    vmem_limit = min(
        max(32 * 1024 * 1024, 4 * tr * _LANES * itemsize + 8 * 1024 * 1024),
        48 * 1024 * 1024,
    )

    out2d = pl.pallas_call(
        _shifted_softplus_kernel,
        out_shape=jax.ShapeDtypeStruct((rows, _LANES), orig_dtype),
        grid=(grid_steps,),
        in_specs=[pl.BlockSpec((tr, _LANES), lambda i: (i, 0))],
        out_specs=pl.BlockSpec((tr, _LANES), lambda i: (i, 0)),
        compiler_params=pltpu.CompilerParams(
            dimension_semantics=("parallel",),
            vmem_limit_bytes=vmem_limit,
        ),
        cost_estimate=pl.CostEstimate(
            flops=3 * rows * _LANES,
            transcendentals=2 * rows * _LANES,  # exp + log1p per element
            bytes_accessed=2 * rows * _LANES * itemsize,
        ),
    )(x2d)

    out_flat = out2d.reshape(-1)
    if padded:
        out_flat = out_flat[:n]
    return out_flat.reshape(orig_shape)


def _reference(x):
    return jnp.where(x > _SOFTPLUS_THRESHOLD, x, jnp.log1p(jnp.exp(x))) - _SHIFT


if __name__ == "__main__":
    key = jax.random.PRNGKey(0)
    k0, k1, k2 = jax.random.split(key, 3)

    # NCHW case, size multiple of 128: zero-copy path (no pad, no slice).
    x = jax.random.normal(k0, (2, 4, 16, 16), dtype=jnp.float32) * 5.0
    out = jax.block_until_ready(shifted_softplus(x))
    assert out.shape == x.shape and out.dtype == x.dtype
    assert jnp.allclose(out, _reference(x), atol=1e-5, rtol=1e-5)

    # Ragged element count (exercises the <128-element pad path), bf16 input,
    # transcendentals computed in f32 inside the kernel.
    y = jax.random.normal(k1, (3, 5, 7), dtype=jnp.bfloat16) * 5.0
    out_y = jax.block_until_ready(shifted_softplus(y))
    assert out_y.shape == y.shape and out_y.dtype == y.dtype
    assert jnp.allclose(
        out_y.astype(jnp.float32),
        _reference(y.astype(jnp.float32)),
        atol=3e-2,
        rtol=3e-2,
    )

    # Row count not a multiple of the block rows: exercises the partial final
    # block (masked OOB store) with no wrapper-side pad/slice.
    z = jax.random.normal(k2, (67, 128), dtype=jnp.float32) * 10.0
    out_z = jax.block_until_ready(shifted_softplus(z))
    assert out_z.shape == z.shape and out_z.dtype == z.dtype
    assert jnp.allclose(out_z, _reference(z), atol=1e-5, rtol=1e-5)

    print("KERNEL_OK")
</pallas_src>

<mosaic_0001>
module attributes {stable_mosaic.version = 11 : i64} {
  func.func @_shifted_softplus_kernel(%arg0: i32, %arg1: memref<16x128xf32, #tpu.memory_space<vmem>>, %arg2: memref<16x128xf32, #tpu.memory_space<vmem>>) attributes {dimension_semantics = [#tpu.dimension_semantics<parallel>], iteration_bounds = array<i64: 1>, scalar_prefetch = 0 : i64, scratch_operands = 0 : i64, tpu.core_type = #tpu.core_type<tc>, window_params = [{transform_indices = @transform_0, window_bounds = array<i64: 16, 128>}, {transform_indices = @transform_1, window_bounds = array<i64: 16, 128>}]} {
    %c0 = arith.constant 0 : index
    %c0_0 = arith.constant 0 : index
    %0 = vector.load %arg1[%c0, %c0_0] : memref<16x128xf32, #tpu.memory_space<vmem>>, vector<16x128xf32>
    %cst = arith.constant 2.000000e+01 : f32
    %1 = vector.broadcast %cst : f32 to vector<16x128xf32>
    %2 = arith.cmpf ogt, %0, %1 : vector<16x128xf32>
    %3 = math.exp %0 : vector<16x128xf32>
    %4 = math.log1p %3 : vector<16x128xf32>
    %5 = arith.select %2, %0, %4 : vector<16x128xi1>, vector<16x128xf32>
    %cst_1 = arith.constant 0.693147182 : f32
    %6 = vector.broadcast %cst_1 : f32 to vector<16x128xf32>
    %7 = arith.subf %5, %6 : vector<16x128xf32>
    %c0_2 = arith.constant 0 : index
    %c0_3 = arith.constant 0 : index
    %8 = vector.load %arg2[%c0_2, %c0_3] : memref<16x128xf32, #tpu.memory_space<vmem>>, vector<16x128xf32>
    tpu.vector_store %arg2[%c0_2, %c0_3], %7 {strides = array<i32>} : memref<16x128xf32, #tpu.memory_space<vmem>>, vector<16x128xf32>,
    return
  }
  func.func @transform_0(%arg0: i32) -> (i32, i32) {
    %c0_i32 = arith.constant 0 : i32
    %c0_i32_0 = arith.constant 0 : i32
    return %arg0, %c0_i32 : i32, i32
  }
  func.func @transform_1(%arg0: i32) -> (i32, i32) {
    %c0_i32 = arith.constant 0 : i32
    %c0_i32_0 = arith.constant 0 : i32
    return %arg0, %c0_i32 : i32, i32
  }
}

</mosaic_0001>

<bundles_post_ra>
// kernel: tpu_custom_call.1
= control target key start
LH: loop header
LB: loop body
LE: loop exit
PB: predicated region body
PF: predicated region fallthrough
CT: control target
= control target key end

     0   :  { %6 = vsyncpa [#allocation3], 0  ;;  %s178_s0 = inlined_call_operand.hbm [shape: f32[16,128], index: 0, kind: input, shape index: {}]   ;;  %s179_s1 = inlined_call_operand.hbm [shape: f32[16,128], index: 1, kind: output, shape index: {}]  }
   0x1   :  { %7 = vsyncpa [#allocation4], 0  ;;  %s134_s6 = smov [#allocation2]   ;;  %s86_s10 = scalar_lea.hbm %s178_s0, 256 }
   0x2   :  { %s13_s7 = sshll.u32 %s134_s6, 4  ;;  %p87_p0 = scmp.ne.s32.totalorder %s178_s0, %s86_s10  ;;  %s14_s7 = int_to_ptr.vmem [resolvable:$true] %s13_s7 }
   0x3   :  { %p90_p1 = scmp.lt.u32.totalorder %s86_s10, %s178_s0 }
   0x5   :  { %p92_p2 = pnand %p90_p1, %p87_p0 }
   0x7   :  { %95 = shalt.err (!%p92_p2)
}
   0x8   :  { %s96_s15 = scalar_lea.vmem %s14_s7, 256  ;;  %p101_p4 = scmp.lt.s32.totalorder %s14_s7, %s14_s7 }
   0x9   :  { %p97_p3 = scmp.ne.s32.totalorder %s14_s7, %s96_s15  ;;  %p102_p5 = scmp.lt.s32.totalorder %s96_s15, %s96_s15 }
   0xb   :  { %p103_p6 = por %p102_p5, %p101_p4 }
   0xd   :  { %p104_p7 = pnand %p103_p6, %p97_p3 }
   0xf   :  { %107 = shalt.err (!%p104_p7)
}
  0x10   :  { %s135_s16 = smov 128   ;;  %s136_s17 = smov 8  }
  0x11   :  { %19 = dma.hbm_to_vmem [thread:$0]  %s178_s0, 256, %s14_s7, [#allocation3], %s135_s16, %s135_s16, %s136_s17  }
  0x12   :  { %130 = dma.done.wait [#allocation3], 256  }
  0x13   :  { %131 = vsyncadd [#allocation3], 4294967040  ;;  %v23_v0 = vld [vmem:[#allocation2] sm:$0xff]  ;;  %v24_v1 = vld [vmem:[#allocation2 + $0x8] sm:$0xff]  ;;  %s137_s0 = smov [#allocation5]  }
  0x14   :  { %v27_v2 = vmul.f32 1.442695, %v23_v0  ;;  %v29_v3 = vmul.f32 1.442695, %v24_v1  ;;  %vm25_vm1 = vcmp.gt.f32.partialorder %v23_v0, 20.0  ;;  %vm26_vm3 = vcmp.gt.f32.partialorder %v24_v1, 20.0 }
  0x15   :  { %s60_s20 = sshll.u32 %s137_s0, 4  ;;  %s61_s20 = int_to_ptr.vmem [resolvable:$true] %s60_s20 }
  0x16   :  { %78 = vpow2.f32 %v27_v2  ;;  %s108_s21 = scalar_lea.vmem %s61_s20, 256  ;;  %p113_p9 = scmp.lt.s32.totalorder %s61_s20, %s61_s20 }
  0x17   :  { %80 = vpow2.f32 %v29_v3  ;;  %p109_p8 = scmp.ne.s32.totalorder %s61_s20, %s108_s21  ;;  %p114_p10 = scmp.lt.s32.totalorder %s108_s21, %s108_s21 }
  0x19   :  { %p115_p11 = por %p114_p10, %p113_p9 }
  0x1b   :  { %p116_p12 = pnand %p115_p11, %p109_p8 }
  0x20   :  { %v79_v4 = vpop.eup %78 }
  0x21   :  { %v81_v5 = vpop.eup %80  ;;  %v31_v6 = vadd.f32 1.0, %v79_v4  ;;  %v34_v8 = vmul.f32 -0.5, %v79_v4  ;;  %v37_v11 = vand.u32 2147483647, %v79_v4 }
  0x22   :  { %v40_v7 = vadd.f32 1.0, %v81_v5  ;;  %v43_v9 = vmul.f32 -0.5, %v81_v5  ;;  %v46_v13 = vand.u32 2147483647, %v81_v5 }
  0x23   :  { %82 = vlog2.f32 %v31_v6  ;;  %v35_v10 = vadd.f32 1.0, %v34_v8  ;;  %vm38_vm0 = vcmp.lt.f32.partialorder %v37_v11, 0.0004427343 }
  0x24   :  { %84 = vlog2.f32 %v40_v7  ;;  %v44_v12 = vadd.f32 1.0, %v43_v9  ;;  %vm47_vm2 = vcmp.lt.f32.partialorder %v46_v13, 0.0004427343 }
  0x25   :  { %v36_v14 = vmul.f32 %v79_v4, %v35_v10 }
  0x26   :  { %v45_v16 = vmul.f32 %v81_v5, %v44_v12 }
  0x2d   :  { %v83_v15 = vpop.eup %82 }
  0x2e   :  { %v85_v17 = vpop.eup %84  ;;  %v33_v18 = vmul.f32 0.6931472, %v83_v15 }
  0x2f   :  { %v42_v19 = vmul.f32 0.6931472, %v85_v17 }
  0x30   :  { %v39_v20 = vsel %vm38_vm0, %v36_v14, %v33_v18 }
  0x31   :  { %v49_v21 = vsel %vm25_vm1, %v23_v0, %v39_v20  ;;  %v48_v22 = vsel %vm47_vm2, %v45_v16, %v42_v19 }
  0x32   :  { %v72_v23 = vadd.f32 -0.6931472, %v49_v21  ;;  %v50_v24 = vsel %vm26_vm3, %v24_v1, %v48_v22 }
  0x33   :  { %v73_v25 = vadd.f32 -0.6931472, %v50_v24 }
  0x34   :  { %53 = vst [vmem:[#allocation5] sm:$0xff] %v72_v23 }
  0x35   :  { %54 = vst [vmem:[#allocation5 + $0x8] sm:$0xff] %v73_v25 }
  0x36   :  { %119 = shalt.err (!%p116_p12)
}
  0x37   :  { %s120_s24 = scalar_lea.hbm %s179_s1, 256 }
  0x38   :  { %p121_p13 = scmp.ne.s32.totalorder %s179_s1, %s120_s24  ;;  %p124_p0 = scmp.lt.u32.totalorder %s120_s24, %s179_s1 }
  0x3a   :  { %p126_p1 = pnand %p124_p0, %p121_p13 }
  0x3c   :  { %129 = shalt.err (!%p126_p1)
}
  0x3d   :  { %66 = dma.vmem_to_hbm [thread:$0]  %s61_s20, 256, %s179_s1, [#allocation4], %s135_s16, %s135_s16, %s136_s17  }
  0x3e   :  { %132 = dma.done.wait [#allocation4], 256  }
  0x3f   :  { %133 = vsyncadd [#allocation4], 4294967040 }
  0x40   :  { %70 = vsyncpa [#allocation3], 1 }
  0x41   :  { %71 = vsyncpa [#allocation4], 1 }

</bundles_post_ra>
